<compile_context>
chip_gen: v5e
topology: v5e:2x2
jax: 0.10.0
libtpu: 0.0.40
codegen_flags: <defaults>
</compile_context>

<pallas_src>
import functools

import numpy as np
import jax
import jax.numpy as jnp
from jax.experimental import pallas as pl
from jax.experimental.pallas import tpu as pltpu


def _shifted_corr_kernel(x_ref, y_ref, out_ref, xc_ref, yc_ref, *, max_shift):
    """One (TB, T) batch tile -> (TB, S) shifted Pearson correlations."""
    x = x_ref[...].astype(jnp.float32)   # upcast in-kernel; DMA stays native dtype
    y = y_ref[...].astype(jnp.float32)
    TB, T = x.shape
    L = T + 2 * max_shift                # padded length (static Python int)
    S = 2 * max_shift + 1
    inv_L = jnp.float32(1.0 / L)

    # Means over the zero-padded length (padding contributes zeros).
    mean_x = jnp.sum(x, axis=1, keepdims=True) * inv_L
    mean_y = jnp.sum(y, axis=1, keepdims=True) * inv_L

    # Zero-padded-to-L, centered signals built in VMEM scratch with offset-0
    # stores only: padding lanes become -mean after centering.
    xc_ref[...] = jnp.broadcast_to(-mean_x, (TB, L))
    yc_ref[...] = jnp.broadcast_to(-mean_y, (TB, L))
    xc_ref[:, :T] = x - mean_x
    yc_ref[:, :T] = y - mean_y

    var_x = jnp.sum(xc_ref[...] * xc_ref[...], axis=1, keepdims=True)
    var_y = jnp.sum(yc_ref[...] * yc_ref[...], axis=1, keepdims=True)
    # No eps on purpose: zero-variance rows give Inf/NaN exactly like torch.corrcoef.
    inv_denom = jax.lax.rsqrt(var_x * var_y)            # EUP rsqrt

    # TODO(synk): if a bundle dump shows the per-shift shifted load + lane reduce
    # saturating the XLU, fold the S reductions into one MXU dot against a
    # ones((L, 1)) operand; for large S switch this unrolled loop to
    # lax.fori_loop + pltpu.roll to bound live ranges.  Kept unrolled since
    # S = 2*max_shift + 1 is small in practice.
    col_idx = jax.lax.broadcasted_iota(jnp.int32, (TB, S), 1)
    corr = jnp.zeros((TB, S), jnp.float32)
    for si, sh in enumerate(range(-max_shift, max_shift + 1)):
        s = sh % L
        # sum_j roll(xc, sh)[j] * yc[j]  ==  xc[:L-s].yc[s:]  +  xc[L-s:].yc[:s]
        cross = jnp.sum(xc_ref[:, :L - s] * yc_ref[:, s:L],
                        axis=1, keepdims=True)
        if s:
            cross = cross + jnp.sum(xc_ref[:, L - s:L] * yc_ref[:, :s],
                                    axis=1, keepdims=True)
        corr = corr + jnp.where(col_idx == si, cross, 0.0)

    # torch/numpy corrcoef clamp to [-1, 1].
    out_ref[...] = jnp.clip(corr * inv_denom, -1.0, 1.0)


def _round_up(x, m):
    return -(-x // m) * m


def _choose_tile(B, T, max_shift, itemsize):
    """Pick the batch tile TB (rows per grid step) against a VMEM budget."""
    L = T + 2 * max_shift
    S = 2 * max_shift + 1
    per_row = (2 * 2 * T * itemsize              # double-buffered preds+labels DMA blocks
               + 2 * L * 4                       # xc / yc VMEM scratch
               + (2 * T + 3 * L + 4 * S) * 4     # f32 temporaries live in the body
               + 2 * S * 4)                      # double-buffered output block
    budget = 8 * 1024 * 1024                     # headroom below v5e's 16 MiB scoped default
    tb = (budget // max(per_row, 1)) // 8 * 8
    tb = int(max(8, min(1024, tb)))
    b8 = _round_up(B, 8)
    if tb >= b8:
        tb = b8
        if b8 >= 16:                             # keep >= 2 steps so both v7x TCs get work
            tb = _round_up(b8 // 2, 8)
    b_pad = _round_up(B, tb)
    return tb, b_pad


def shifted_correlations(preds, labels, max_shift):
    """(B, S) Pearson correlations of circularly rolled zero-padded preds vs labels."""
    assert preds.ndim == 2 and preds.shape == labels.shape
    B, T = preds.shape
    L = T + 2 * max_shift
    S = 2 * max_shift + 1
    itemsize = max(preds.dtype.itemsize, labels.dtype.itemsize)
    TB, B_pad = _choose_tile(B, T, max_shift, itemsize)
    if B_pad != B:
        # Pad the batch (rows of zeros) instead of the TB=B fallback; padded rows
        # produce NaN correlations and are sliced off below.
        preds = jnp.pad(preds, ((0, B_pad - B), (0, 0)))
        labels = jnp.pad(labels, ((0, B_pad - B), (0, 0)))

    kernel = functools.partial(_shifted_corr_kernel, max_shift=max_shift)
    out = pl.pallas_call(
        kernel,
        out_shape=jax.ShapeDtypeStruct((B_pad, S), jnp.float32),
        grid=(B_pad // TB,),
        in_specs=[
            pl.BlockSpec((TB, T), lambda i: (i, 0)),
            pl.BlockSpec((TB, T), lambda i: (i, 0)),
        ],
        out_specs=pl.BlockSpec((TB, S), lambda i: (i, 0)),
        scratch_shapes=[
            pltpu.VMEM((TB, L), jnp.float32),    # centered padded preds
            pltpu.VMEM((TB, L), jnp.float32),    # centered padded labels
        ],
        compiler_params=pltpu.CompilerParams(
            dimension_semantics=("parallel",),
            vmem_limit_bytes=32 * 1024 * 1024,
        ),
    )(preds, labels)
    return out[:B] if B_pad != B else out


def correlations_to_loss(correlations):
    # TODO(synk): the PyTorch base class leaves correlations_to_loss abstract
    # (raises NotImplementedError); use 1 - max(corr) as a concrete
    # shift-invariant reduction so forward() is runnable end to end.
    return 1.0 - jnp.max(correlations)


def shifted_correlation_loss(preds, labels, max_shift):
    """Mirrors ShiftedCorrelationLoss.forward: mean over batch of per-item loss."""
    corrs = shifted_correlations(preds, labels, max_shift)   # (B, S)
    per_batch = jax.vmap(correlations_to_loss)(corrs)        # (B,)
    return jnp.sum(per_batch) / preds.shape[0]


def _numpy_reference(preds, labels, max_shift):
    """Torch-faithful reference: symmetric F.pad + torch.roll + corrcoef per item."""
    preds = np.asarray(preds, np.float64)
    labels = np.asarray(labels, np.float64)
    B = preds.shape[0]
    S = 2 * max_shift + 1
    xp = np.pad(preds, ((0, 0), (max_shift, max_shift)))
    yp = np.pad(labels, ((0, 0), (max_shift, max_shift)))
    ref = np.zeros((B, S), np.float64)
    for b in range(B):
        for si, sh in enumerate(range(-max_shift, max_shift + 1)):
            rolled = np.roll(xp[b], sh, axis=-1)
            ref[b, si] = np.corrcoef(np.stack([rolled, yp[b]]))[0, 1]
    return ref


if __name__ == "__main__":
    key = jax.random.PRNGKey(0)
    k1, k2, k3, k4 = jax.random.split(key, 4)

    # Case 1: small shapes implied by the module (batch of 1-D signals).
    B, T, MAX_SHIFT = 2, 16, 3
    preds = jax.random.normal(k1, (B, T), jnp.float32)
    labels = jax.random.normal(k2, (B, T), jnp.float32)
    corrs = shifted_correlations(preds, labels, MAX_SHIFT)
    loss = shifted_correlation_loss(preds, labels, MAX_SHIFT)
    jax.block_until_ready((corrs, loss))
    np.testing.assert_allclose(np.asarray(corrs),
                               _numpy_reference(preds, labels, MAX_SHIFT),
                               rtol=1e-4, atol=1e-5)

    # Case 2: non-multiple-of-8 batch exercises the row-padding + multi-step grid path.
    B2, T2, MS2 = 10, 32, 2
    preds2 = jax.random.normal(k3, (B2, T2), jnp.float32)
    labels2 = jax.random.normal(k4, (B2, T2), jnp.float32)
    corrs2 = jax.block_until_ready(shifted_correlations(preds2, labels2, MS2))
    np.testing.assert_allclose(np.asarray(corrs2),
                               _numpy_reference(preds2, labels2, MS2),
                               rtol=1e-4, atol=1e-5)

    print("KERNEL_OK")
</pallas_src>

<mosaic_0001>
module attributes {stable_mosaic.version = 11 : i64} {
  func.func @_shifted_corr_kernel(%arg0: i32, %arg1: memref<8x16xf32, #tpu.memory_space<vmem>>, %arg2: memref<8x16xf32, #tpu.memory_space<vmem>>, %arg3: memref<8x7xf32, #tpu.memory_space<vmem>>, %arg4: memref<8x22xf32, #tpu.memory_space<vmem>>, %arg5: memref<8x22xf32, #tpu.memory_space<vmem>>) attributes {dimension_semantics = [#tpu.dimension_semantics<parallel>], iteration_bounds = array<i64: 1>, scalar_prefetch = 0 : i64, scratch_operands = 2 : i64, tpu.core_type = #tpu.core_type<tc>, window_params = [{transform_indices = @transform_0, window_bounds = array<i64: 8, 16>}, {transform_indices = @transform_1, window_bounds = array<i64: 8, 16>}, {transform_indices = @transform_2, window_bounds = array<i64: 8, 7>}]} {
    %c0 = arith.constant 0 : index
    %c0_0 = arith.constant 0 : index
    %0 = vector.load %arg1[%c0, %c0_0] : memref<8x16xf32, #tpu.memory_space<vmem>>, vector<8x16xf32>
    %c0_1 = arith.constant 0 : index
    %c0_2 = arith.constant 0 : index
    %1 = vector.load %arg2[%c0_1, %c0_2] : memref<8x16xf32, #tpu.memory_space<vmem>>, vector<8x16xf32>
    %cst = arith.constant dense<0.000000e+00> : vector<8xf32>
    %2 = vector.multi_reduction <add>, %0, %cst [1] : vector<8x16xf32> to vector<8xf32>
    %3 = vector.shape_cast %2 : vector<8xf32> to vector<8x1xf32>
    %cst_3 = arith.constant 0.0454545468 : f32
    %4 = vector.broadcast %cst_3 : f32 to vector<8x1xf32>
    %5 = arith.mulf %3, %4 : vector<8x1xf32>
    %cst_4 = arith.constant dense<0.000000e+00> : vector<8xf32>
    %6 = vector.multi_reduction <add>, %1, %cst_4 [1] : vector<8x16xf32> to vector<8xf32>
    %7 = vector.shape_cast %6 : vector<8xf32> to vector<8x1xf32>
    %cst_5 = arith.constant 0.0454545468 : f32
    %8 = vector.broadcast %cst_5 : f32 to vector<8x1xf32>
    %9 = arith.mulf %7, %8 : vector<8x1xf32>
    %cst_6 = arith.constant 0.000000e+00 : f32
    %10 = vector.broadcast %cst_6 : f32 to vector<8x1xf32>
    %11 = arith.subf %10, %5 : vector<8x1xf32>
    %12 = vector.shape_cast %11 : vector<8x1xf32> to vector<8x1xf32>
    %13 = vector.broadcast %12 : vector<8x1xf32> to vector<8x22xf32>
    %c0_7 = arith.constant 0 : index
    %c0_8 = arith.constant 0 : index
    %14 = vector.load %arg4[%c0_7, %c0_8] : memref<8x22xf32, #tpu.memory_space<vmem>>, vector<8x22xf32>
    tpu.vector_store %arg4[%c0_7, %c0_8], %13 {strides = array<i32>} : memref<8x22xf32, #tpu.memory_space<vmem>>, vector<8x22xf32>,
    %cst_9 = arith.constant 0.000000e+00 : f32
    %15 = vector.broadcast %cst_9 : f32 to vector<8x1xf32>
    %16 = arith.subf %15, %9 : vector<8x1xf32>
    %17 = vector.shape_cast %16 : vector<8x1xf32> to vector<8x1xf32>
    %18 = vector.broadcast %17 : vector<8x1xf32> to vector<8x22xf32>
    %c0_10 = arith.constant 0 : index
    %c0_11 = arith.constant 0 : index
    %19 = vector.load %arg5[%c0_10, %c0_11] : memref<8x22xf32, #tpu.memory_space<vmem>>, vector<8x22xf32>
    tpu.vector_store %arg5[%c0_10, %c0_11], %18 {strides = array<i32>} : memref<8x22xf32, #tpu.memory_space<vmem>>, vector<8x22xf32>,
    %20 = vector.broadcast %5 : vector<8x1xf32> to vector<8x16xf32>
    %21 = arith.subf %0, %20 : vector<8x16xf32>
    %c0_12 = arith.constant 0 : index
    %c0_13 = arith.constant 0 : index
    %22 = vector.load %arg4[%c0_12, %c0_13] : memref<8x22xf32, #tpu.memory_space<vmem>>, vector<8x16xf32>
    tpu.vector_store %arg4[%c0_12, %c0_13], %21 {strides = array<i32>} : memref<8x22xf32, #tpu.memory_space<vmem>>, vector<8x16xf32>,
    %23 = vector.broadcast %9 : vector<8x1xf32> to vector<8x16xf32>
    %24 = arith.subf %1, %23 : vector<8x16xf32>
    %c0_14 = arith.constant 0 : index
    %c0_15 = arith.constant 0 : index
    %25 = vector.load %arg5[%c0_14, %c0_15] : memref<8x22xf32, #tpu.memory_space<vmem>>, vector<8x16xf32>
    tpu.vector_store %arg5[%c0_14, %c0_15], %24 {strides = array<i32>} : memref<8x22xf32, #tpu.memory_space<vmem>>, vector<8x16xf32>,
    %c0_16 = arith.constant 0 : index
    %c0_17 = arith.constant 0 : index
    %26 = vector.load %arg4[%c0_16, %c0_17] : memref<8x22xf32, #tpu.memory_space<vmem>>, vector<8x22xf32>
    %c0_18 = arith.constant 0 : index
    %c0_19 = arith.constant 0 : index
    %27 = vector.load %arg4[%c0_18, %c0_19] : memref<8x22xf32, #tpu.memory_space<vmem>>, vector<8x22xf32>
    %28 = arith.mulf %26, %27 : vector<8x22xf32>
    %cst_20 = arith.constant dense<0.000000e+00> : vector<8xf32>
    %29 = vector.multi_reduction <add>, %28, %cst_20 [1] : vector<8x22xf32> to vector<8xf32>
    %30 = vector.shape_cast %29 : vector<8xf32> to vector<8x1xf32>
    %c0_21 = arith.constant 0 : index
    %c0_22 = arith.constant 0 : index
    %31 = vector.load %arg5[%c0_21, %c0_22] : memref<8x22xf32, #tpu.memory_space<vmem>>, vector<8x22xf32>
    %c0_23 = arith.constant 0 : index
    %c0_24 = arith.constant 0 : index
    %32 = vector.load %arg5[%c0_23, %c0_24] : memref<8x22xf32, #tpu.memory_space<vmem>>, vector<8x22xf32>
    %33 = arith.mulf %31, %32 : vector<8x22xf32>
    %cst_25 = arith.constant dense<0.000000e+00> : vector<8xf32>
    %34 = vector.multi_reduction <add>, %33, %cst_25 [1] : vector<8x22xf32> to vector<8xf32>
    %35 = vector.shape_cast %34 : vector<8xf32> to vector<8x1xf32>
    %36 = arith.mulf %30, %35 : vector<8x1xf32>
    %37 = math.rsqrt %36 : vector<8x1xf32>
    %38 = tpu.iota {dimensions = array<i32: 1>} : vector<8x7xi32>
    %cst_26 = arith.constant 0.000000e+00 : f32
    %39 = vector.broadcast %cst_26 : f32 to vector<8x7xf32>
    %c0_27 = arith.constant 0 : index
    %c0_28 = arith.constant 0 : index
    %40 = vector.load %arg4[%c0_27, %c0_28] : memref<8x22xf32, #tpu.memory_space<vmem>>, vector<8x3xf32>
    %c0_29 = arith.constant 0 : index
    %c19 = arith.constant 19 : index
    %41 = vector.load %arg5[%c0_29, %c19] : memref<8x22xf32, #tpu.memory_space<vmem>>, vector<8x3xf32>
    %42 = arith.mulf %40, %41 : vector<8x3xf32>
    %cst_30 = arith.constant dense<0.000000e+00> : vector<8xf32>
    %43 = vector.multi_reduction <add>, %42, %cst_30 [1] : vector<8x3xf32> to vector<8xf32>
    %44 = vector.shape_cast %43 : vector<8xf32> to vector<8x1xf32>
    %c0_31 = arith.constant 0 : index
    %c3 = arith.constant 3 : index
    %45 = vector.load %arg4[%c0_31, %c3] : memref<8x22xf32, #tpu.memory_space<vmem>>, vector<8x19xf32>
    %c0_32 = arith.constant 0 : index
    %c0_33 = arith.constant 0 : index
    %46 = vector.load %arg5[%c0_32, %c0_33] : memref<8x22xf32, #tpu.memory_space<vmem>>, vector<8x19xf32>
    %47 = arith.mulf %45, %46 : vector<8x19xf32>
    %cst_34 = arith.constant dense<0.000000e+00> : vector<8xf32>
    %48 = vector.multi_reduction <add>, %47, %cst_34 [1] : vector<8x19xf32> to vector<8xf32>
    %49 = vector.shape_cast %48 : vector<8xf32> to vector<8x1xf32>
    %50 = arith.addf %44, %49 : vector<8x1xf32>
    %c0_i32 = arith.constant 0 : i32
    %51 = vector.broadcast %c0_i32 : i32 to vector<8x7xi32>
    %52 = arith.cmpi eq, %38, %51 : vector<8x7xi32>
    %cst_35 = arith.constant 0.000000e+00 : f32
    %53 = vector.shape_cast %50 : vector<8x1xf32> to vector<8x1xf32>
    %54 = vector.broadcast %53 : vector<8x1xf32> to vector<8x7xf32>
    %55 = vector.broadcast %cst_35 : f32 to vector<8x7xf32>
    %56 = arith.select %52, %54, %55 : vector<8x7xi1>, vector<8x7xf32>
    %57 = arith.addf %39, %56 : vector<8x7xf32>
    %c0_36 = arith.constant 0 : index
    %c0_37 = arith.constant 0 : index
    %58 = vector.load %arg4[%c0_36, %c0_37] : memref<8x22xf32, #tpu.memory_space<vmem>>, vector<8x2xf32>
    %c0_38 = arith.constant 0 : index
    %c20 = arith.constant 20 : index
    %59 = vector.load %arg5[%c0_38, %c20] : memref<8x22xf32, #tpu.memory_space<vmem>>, vector<8x2xf32>
    %60 = arith.mulf %58, %59 : vector<8x2xf32>
    %cst_39 = arith.constant dense<0.000000e+00> : vector<8xf32>
    %61 = vector.multi_reduction <add>, %60, %cst_39 [1] : vector<8x2xf32> to vector<8xf32>
    %62 = vector.shape_cast %61 : vector<8xf32> to vector<8x1xf32>
    %c0_40 = arith.constant 0 : index
    %c2 = arith.constant 2 : index
    %63 = vector.load %arg4[%c0_40, %c2] : memref<8x22xf32, #tpu.memory_space<vmem>>, vector<8x20xf32>
    %c0_41 = arith.constant 0 : index
    %c0_42 = arith.constant 0 : index
    %64 = vector.load %arg5[%c0_41, %c0_42] : memref<8x22xf32, #tpu.memory_space<vmem>>, vector<8x20xf32>
    %65 = arith.mulf %63, %64 : vector<8x20xf32>
    %cst_43 = arith.constant dense<0.000000e+00> : vector<8xf32>
    %66 = vector.multi_reduction <add>, %65, %cst_43 [1] : vector<8x20xf32> to vector<8xf32>
    %67 = vector.shape_cast %66 : vector<8xf32> to vector<8x1xf32>
    %68 = arith.addf %62, %67 : vector<8x1xf32>
    %c1_i32 = arith.constant 1 : i32
    %69 = vector.broadcast %c1_i32 : i32 to vector<8x7xi32>
    %70 = arith.cmpi eq, %38, %69 : vector<8x7xi32>
    %cst_44 = arith.constant 0.000000e+00 : f32
    %71 = vector.shape_cast %68 : vector<8x1xf32> to vector<8x1xf32>
    %72 = vector.broadcast %71 : vector<8x1xf32> to vector<8x7xf32>
    %73 = vector.broadcast %cst_44 : f32 to vector<8x7xf32>
    %74 = arith.select %70, %72, %73 : vector<8x7xi1>, vector<8x7xf32>
    %75 = arith.addf %57, %74 : vector<8x7xf32>
    %c0_45 = arith.constant 0 : index
    %c0_46 = arith.constant 0 : index
    %76 = vector.load %arg4[%c0_45, %c0_46] : memref<8x22xf32, #tpu.memory_space<vmem>>, vector<8x1xf32>
    %c0_47 = arith.constant 0 : index
    %c21 = arith.constant 21 : index
    %77 = vector.load %arg5[%c0_47, %c21] : memref<8x22xf32, #tpu.memory_space<vmem>>, vector<8x1xf32>
    %78 = arith.mulf %76, %77 : vector<8x1xf32>
    %cst_48 = arith.constant dense<0.000000e+00> : vector<8xf32>
    %79 = vector.multi_reduction <add>, %78, %cst_48 [1] : vector<8x1xf32> to vector<8xf32>
    %80 = vector.shape_cast %79 : vector<8xf32> to vector<8x1xf32>
    %c0_49 = arith.constant 0 : index
    %c1 = arith.constant 1 : index
    %81 = vector.load %arg4[%c0_49, %c1] : memref<8x22xf32, #tpu.memory_space<vmem>>, vector<8x21xf32>
    %c0_50 = arith.constant 0 : index
    %c0_51 = arith.constant 0 : index
    %82 = vector.load %arg5[%c0_50, %c0_51] : memref<8x22xf32, #tpu.memory_space<vmem>>, vector<8x21xf32>
    %83 = arith.mulf %81, %82 : vector<8x21xf32>
    %cst_52 = arith.constant dense<0.000000e+00> : vector<8xf32>
    %84 = vector.multi_reduction <add>, %83, %cst_52 [1] : vector<8x21xf32> to vector<8xf32>
    %85 = vector.shape_cast %84 : vector<8xf32> to vector<8x1xf32>
    %86 = arith.addf %80, %85 : vector<8x1xf32>
    %c2_i32 = arith.constant 2 : i32
    %87 = vector.broadcast %c2_i32 : i32 to vector<8x7xi32>
    %88 = arith.cmpi eq, %38, %87 : vector<8x7xi32>
    %cst_53 = arith.constant 0.000000e+00 : f32
    %89 = vector.shape_cast %86 : vector<8x1xf32> to vector<8x1xf32>
    %90 = vector.broadcast %89 : vector<8x1xf32> to vector<8x7xf32>
    %91 = vector.broadcast %cst_53 : f32 to vector<8x7xf32>
    %92 = arith.select %88, %90, %91 : vector<8x7xi1>, vector<8x7xf32>
    %93 = arith.addf %75, %92 : vector<8x7xf32>
    %c0_54 = arith.constant 0 : index
    %c0_55 = arith.constant 0 : index
    %94 = vector.load %arg4[%c0_54, %c0_55] : memref<8x22xf32, #tpu.memory_space<vmem>>, vector<8x22xf32>
    %c0_56 = arith.constant 0 : index
    %c0_57 = arith.constant 0 : index
    %95 = vector.load %arg5[%c0_56, %c0_57] : memref<8x22xf32, #tpu.memory_space<vmem>>, vector<8x22xf32>
    %96 = arith.mulf %94, %95 : vector<8x22xf32>
    %cst_58 = arith.constant dense<0.000000e+00> : vector<8xf32>
    %97 = vector.multi_reduction <add>, %96, %cst_58 [1] : vector<8x22xf32> to vector<8xf32>
    %98 = vector.shape_cast %97 : vector<8xf32> to vector<8x1xf32>
    %c3_i32 = arith.constant 3 : i32
    %99 = vector.broadcast %c3_i32 : i32 to vector<8x7xi32>
    %100 = arith.cmpi eq, %38, %99 : vector<8x7xi32>
    %cst_59 = arith.constant 0.000000e+00 : f32
    %101 = vector.shape_cast %98 : vector<8x1xf32> to vector<8x1xf32>
    %102 = vector.broadcast %101 : vector<8x1xf32> to vector<8x7xf32>
    %103 = vector.broadcast %cst_59 : f32 to vector<8x7xf32>
    %104 = arith.select %100, %102, %103 : vector<8x7xi1>, vector<8x7xf32>
    %105 = arith.addf %93, %104 : vector<8x7xf32>
    %c0_60 = arith.constant 0 : index
    %c0_61 = arith.constant 0 : index
    %106 = vector.load %arg4[%c0_60, %c0_61] : memref<8x22xf32, #tpu.memory_space<vmem>>, vector<8x21xf32>
    %c0_62 = arith.constant 0 : index
    %c1_63 = arith.constant 1 : index
    %107 = vector.load %arg5[%c0_62, %c1_63] : memref<8x22xf32, #tpu.memory_space<vmem>>, vector<8x21xf32>
    %108 = arith.mulf %106, %107 : vector<8x21xf32>
    %cst_64 = arith.constant dense<0.000000e+00> : vector<8xf32>
    %109 = vector.multi_reduction <add>, %108, %cst_64 [1] : vector<8x21xf32> to vector<8xf32>
    %110 = vector.shape_cast %109 : vector<8xf32> to vector<8x1xf32>
    %c0_65 = arith.constant 0 : index
    %c21_66 = arith.constant 21 : index
    %111 = vector.load %arg4[%c0_65, %c21_66] : memref<8x22xf32, #tpu.memory_space<vmem>>, vector<8x1xf32>
    %c0_67 = arith.constant 0 : index
    %c0_68 = arith.constant 0 : index
    %112 = vector.load %arg5[%c0_67, %c0_68] : memref<8x22xf32, #tpu.memory_space<vmem>>, vector<8x1xf32>
    %113 = arith.mulf %111, %112 : vector<8x1xf32>
    %cst_69 = arith.constant dense<0.000000e+00> : vector<8xf32>
    %114 = vector.multi_reduction <add>, %113, %cst_69 [1] : vector<8x1xf32> to vector<8xf32>
    %115 = vector.shape_cast %114 : vector<8xf32> to vector<8x1xf32>
    %116 = arith.addf %110, %115 : vector<8x1xf32>
    %c4_i32 = arith.constant 4 : i32
    %117 = vector.broadcast %c4_i32 : i32 to vector<8x7xi32>
    %118 = arith.cmpi eq, %38, %117 : vector<8x7xi32>
    %cst_70 = arith.constant 0.000000e+00 : f32
    %119 = vector.shape_cast %116 : vector<8x1xf32> to vector<8x1xf32>
    %120 = vector.broadcast %119 : vector<8x1xf32> to vector<8x7xf32>
    %121 = vector.broadcast %cst_70 : f32 to vector<8x7xf32>
    %122 = arith.select %118, %120, %121 : vector<8x7xi1>, vector<8x7xf32>
    %123 = arith.addf %105, %122 : vector<8x7xf32>
    %c0_71 = arith.constant 0 : index
    %c0_72 = arith.constant 0 : index
    %124 = vector.load %arg4[%c0_71, %c0_72] : memref<8x22xf32, #tpu.memory_space<vmem>>, vector<8x20xf32>
    %c0_73 = arith.constant 0 : index
    %c2_74 = arith.constant 2 : index
    %125 = vector.load %arg5[%c0_73, %c2_74] : memref<8x22xf32, #tpu.memory_space<vmem>>, vector<8x20xf32>
    %126 = arith.mulf %124, %125 : vector<8x20xf32>
    %cst_75 = arith.constant dense<0.000000e+00> : vector<8xf32>
    %127 = vector.multi_reduction <add>, %126, %cst_75 [1] : vector<8x20xf32> to vector<8xf32>
    %128 = vector.shape_cast %127 : vector<8xf32> to vector<8x1xf32>
    %c0_76 = arith.constant 0 : index
    %c20_77 = arith.constant 20 : index
    %129 = vector.load %arg4[%c0_76, %c20_77] : memref<8x22xf32, #tpu.memory_space<vmem>>, vector<8x2xf32>
    %c0_78 = arith.constant 0 : index
    %c0_79 = arith.constant 0 : index
    %130 = vector.load %arg5[%c0_78, %c0_79] : memref<8x22xf32, #tpu.memory_space<vmem>>, vector<8x2xf32>
    %131 = arith.mulf %129, %130 : vector<8x2xf32>
    %cst_80 = arith.constant dense<0.000000e+00> : vector<8xf32>
    %132 = vector.multi_reduction <add>, %131, %cst_80 [1] : vector<8x2xf32> to vector<8xf32>
    %133 = vector.shape_cast %132 : vector<8xf32> to vector<8x1xf32>
    %134 = arith.addf %128, %133 : vector<8x1xf32>
    %c5_i32 = arith.constant 5 : i32
    %135 = vector.broadcast %c5_i32 : i32 to vector<8x7xi32>
    %136 = arith.cmpi eq, %38, %135 : vector<8x7xi32>
    %cst_81 = arith.constant 0.000000e+00 : f32
    %137 = vector.shape_cast %134 : vector<8x1xf32> to vector<8x1xf32>
    %138 = vector.broadcast %137 : vector<8x1xf32> to vector<8x7xf32>
    %139 = vector.broadcast %cst_81 : f32 to vector<8x7xf32>
    %140 = arith.select %136, %138, %139 : vector<8x7xi1>, vector<8x7xf32>
    %141 = arith.addf %123, %140 : vector<8x7xf32>
    %c0_82 = arith.constant 0 : index
    %c0_83 = arith.constant 0 : index
    %142 = vector.load %arg4[%c0_82, %c0_83] : memref<8x22xf32, #tpu.memory_space<vmem>>, vector<8x19xf32>
    %c0_84 = arith.constant 0 : index
    %c3_85 = arith.constant 3 : index
    %143 = vector.load %arg5[%c0_84, %c3_85] : memref<8x22xf32, #tpu.memory_space<vmem>>, vector<8x19xf32>
    %144 = arith.mulf %142, %143 : vector<8x19xf32>
    %cst_86 = arith.constant dense<0.000000e+00> : vector<8xf32>
    %145 = vector.multi_reduction <add>, %144, %cst_86 [1] : vector<8x19xf32> to vector<8xf32>
    %146 = vector.shape_cast %145 : vector<8xf32> to vector<8x1xf32>
    %c0_87 = arith.constant 0 : index
    %c19_88 = arith.constant 19 : index
    %147 = vector.load %arg4[%c0_87, %c19_88] : memref<8x22xf32, #tpu.memory_space<vmem>>, vector<8x3xf32>
    %c0_89 = arith.constant 0 : index
    %c0_90 = arith.constant 0 : index
    %148 = vector.load %arg5[%c0_89, %c0_90] : memref<8x22xf32, #tpu.memory_space<vmem>>, vector<8x3xf32>
    %149 = arith.mulf %147, %148 : vector<8x3xf32>
    %cst_91 = arith.constant dense<0.000000e+00> : vector<8xf32>
    %150 = vector.multi_reduction <add>, %149, %cst_91 [1] : vector<8x3xf32> to vector<8xf32>
    %151 = vector.shape_cast %150 : vector<8xf32> to vector<8x1xf32>
    %152 = arith.addf %146, %151 : vector<8x1xf32>
    %c6_i32 = arith.constant 6 : i32
    %153 = vector.broadcast %c6_i32 : i32 to vector<8x7xi32>
    %154 = arith.cmpi eq, %38, %153 : vector<8x7xi32>
    %cst_92 = arith.constant 0.000000e+00 : f32
    %155 = vector.shape_cast %152 : vector<8x1xf32> to vector<8x1xf32>
    %156 = vector.broadcast %155 : vector<8x1xf32> to vector<8x7xf32>
    %157 = vector.broadcast %cst_92 : f32 to vector<8x7xf32>
    %158 = arith.select %154, %156, %157 : vector<8x7xi1>, vector<8x7xf32>
    %159 = arith.addf %141, %158 : vector<8x7xf32>
    %160 = vector.broadcast %37 : vector<8x1xf32> to vector<8x7xf32>
    %161 = arith.mulf %159, %160 : vector<8x7xf32>
    %cst_93 = arith.constant -1.000000e+00 : f32
    %cst_94 = arith.constant 1.000000e+00 : f32
    %162 = vector.broadcast %cst_93 : f32 to vector<8x7xf32>
    %163 = arith.maximumf %162, %161 : vector<8x7xf32>
    %164 = vector.broadcast %cst_94 : f32 to vector<8x7xf32>
    %165 = arith.minimumf %164, %163 : vector<8x7xf32>
    %c0_95 = arith.constant 0 : index
    %c0_96 = arith.constant 0 : index
    %166 = vector.load %arg3[%c0_95, %c0_96] : memref<8x7xf32, #tpu.memory_space<vmem>>, vector<8x7xf32>
    tpu.vector_store %arg3[%c0_95, %c0_96], %165 {strides = array<i32>} : memref<8x7xf32, #tpu.memory_space<vmem>>, vector<8x7xf32>,
    return
  }
  func.func @transform_0(%arg0: i32) -> (i32, i32) {
    %c0_i32 = arith.constant 0 : i32
    %c0_i32_0 = arith.constant 0 : i32
    return %arg0, %c0_i32 : i32, i32
  }
  func.func @transform_1(%arg0: i32) -> (i32, i32) {
    %c0_i32 = arith.constant 0 : i32
    %c0_i32_0 = arith.constant 0 : i32
    return %arg0, %c0_i32 : i32, i32
  }
  func.func @transform_2(%arg0: i32) -> (i32, i32) {
    %c0_i32 = arith.constant 0 : i32
    %c0_i32_0 = arith.constant 0 : i32
    return %arg0, %c0_i32 : i32, i32
  }
}

</mosaic_0001>

<bundles_post_ra>
// kernel: tpu_custom_call.1
= control target key start
LH: loop header
LB: loop body
LE: loop exit
PB: predicated region body
PF: predicated region fallthrough
CT: control target
= control target key end

     0   :  { %7 = vsyncpa [#allocation5], 0  ;;  %s440_s0 = inlined_call_operand.hbm [shape: f32[8,16], index: 0, kind: input, shape index: {}]   ;;  %s441_s1 = inlined_call_operand.hbm [shape: f32[8,16], index: 1, kind: input, shape index: {}]   ;;  %s442_s2 = inlined_call_operand.hbm [shape: f32[8,7], index: 2, kind: output, shape index: {}]  }
   0x1   :  { %8 = vsyncpa [#allocation8], 0 }
   0x2   :  { %9 = vsyncpa [#allocation6], 0  ;;  %s15_s11 = sshll.u32 %s440_s0, 4  ;;  %s354_s12 = smov [#allocation4]   ;;  %s16_s11 = int_to_ptr.hbm [resolvable:$true] %s15_s11 }
   0x3   :  { %s17_s13 = sshll.u32 %s354_s12, 4  ;;  %s26_s16 = sshll.u32 %s441_s1, 4  ;;  %s18_s13 = int_to_ptr.vmem [resolvable:$true] %s17_s13  ;;  %s27_s16 = int_to_ptr.hbm [resolvable:$true] %s26_s16 }
   0x4   :  { %20 = dma.hbm_to_vmem [thread:$0]  %s16_s11, 128, %s18_s13, [#allocation5]  }
   0x5   :  { %s355_s17 = smov [#allocation7]  }
   0x6   :  { %s28_s18 = sshll.u32 %s355_s17, 4  ;;  %s29_s18 = int_to_ptr.vmem [resolvable:$true] %s28_s18 }
   0x7   :  { %31 = dma.hbm_to_vmem [thread:$0]  %s27_s16, 128, %s29_s18, [#allocation8]  }
   0x8   :  { %348 = dma.done.wait [#allocation5], 128  }
   0x9   :  { %349 = vsyncadd [#allocation5], 4294967168 }
   0xa   :  { %350 = dma.done.wait [#allocation8], 128  }
   0xb   :  { %351 = vsyncadd [#allocation8], 4294967168  ;;  %vm42_vm0 = vcmask 130048   ;;  %v40_v0 = vld [vmem:[#allocation4] sm:$0xff]  ;;  %v41_v2 = vld [vmem:[#allocation7] sm:$0xff]  ;;  %vm52_vm1 = vcmask 179200  }
   0xc   :  { %v43_v1 = vsel %vm42_vm0, %v40_v0, 0.0  ;;  %v47_v3 = vsel %vm42_vm0, %v41_v2, 0.0  ;;  %s356_s0 = smov 108   ;;  %s357_s1 = smov 3   ;;  %vm145_vm2 = vcmask 171008   ;;  %vm88_vm3 = vcmask 23552  }
   0xd   :  { %44 = vadd.xlane.f32.xlu0 %v43_v1  ;;  %s358_s19 = smov 109   ;;  %s359_s20 = smov 127   ;;  %vm112_vm4 = vcmask 15360   ;;  %vm124_vm5 = vcmask 162816   ;;  %v368_v52 = vmov 21   ;;  %vm100_vm6 = vcmask 154624  }
   0xe   :  { %s360_s21 = smov 107   ;;  %s361_s22 = smov 2   ;;  %271 = vset.pattern.permute.xlu1 %v368_v52  ;;  %273 = vset.pattern.permute.xlu0 %v368_v52  ;;  %v369_v63 = vmov 0  }
   0xf   :  { %s362_s23 = smov 21   ;;  %s363_s24 = smov 19   ;;  %272 = vset.pattern.permute.xlu2 %v369_v63 }
  0x10   :  { %s364_s25 = smov 1   ;;  %s365_s26 = smov 126  }
  0x11   :  { %s366_s27 = smov 20   ;;  %s367_s28 = smov 125  }
  0x12   :  { %s370_s29 = smov [#allocation9]   ;;  %s242_s5 = sshll.u32 %s442_s2, 4  ;;  %s243_s5 = int_to_ptr.hbm [resolvable:$true] %s242_s5 }
  0x13   :  { %s240_s30 = sshll.u32 %s370_s29, 4  ;;  %s241_s30 = int_to_ptr.vmem [resolvable:$true] %s240_s30 }
  0x15   :  { %48 = vadd.xlane.f32.xlu0 %v47_v3 }
  0x80   :  { %v45_v4 = vpop.xlane.xlu0 %44 }
  0x81   :  { %v46_v5 = vmul.f32 0.045454547, %v45_v4 }
  0x83   :  { %v51_v6 = vsub.f32 0.0, %v46_v5  ;;  %v56_v7 = vsub.f32 %v40_v0, %v46_v5 }
  0x85   :  { %53 = vst.msk [vmem:[#allocation2] sm:$0xff] %vm52_vm1, %v51_v6 }
  0x86   :  { %57 = vst.msk [vmem:[#allocation2] sm:$0xff] %vm42_vm0, %v56_v7 }
  0x88   :  { %v49_v8 = vpop.xlane.xlu0 %48 }
  0x89   :  { %v50_v9 = vmul.f32 0.045454547, %v49_v8  ;;  %v81_v8 = vlaneseq }
  0x8b   :  { %v54_v10 = vsub.f32 0.0, %v50_v9  ;;  %v58_v11 = vsub.f32 %v41_v2, %v50_v9 }
  0x8d   :  { %55 = vst.msk [vmem:[#allocation3] sm:$0xff] %vm52_vm1, %v54_v10  ;;  %v398_v12 = vld [vmem:[#allocation2] sm:$0xff]  ;;  %v82_v10 = vand.u32 127, %v81_v8 }
  0x8e   :  { %59 = vst.msk [vmem:[#allocation3] sm:$0xff] %vm42_vm0, %v58_v11  ;;  %v61_v18 = vmul.f32 %v398_v12, %v398_v12 }
  0x8f   :  { %vm129_vm7 = vcmp.eq.s32.totalorder %v82_v10, 1  ;;  %vm105_vm8 = vcmp.eq.s32.totalorder %v82_v10, 0  ;;  %vm150_vm9 = vcmp.eq.s32.totalorder %v82_v10, 2  ;;  %vm162_vm10 = vcmp.eq.s32.totalorder %v82_v10, 3 }
  0x90   :  { %v62_v19 = vsel %vm52_vm1, %v61_v18, 0.0  ;;  %vm178_vm11 = vcmp.eq.s32.totalorder %v82_v10, 4  ;;  %vm205_vm12 = vcmp.eq.s32.totalorder %v82_v10, 5  ;;  %vm227_vm13 = vcmp.eq.s32.totalorder %v82_v10, 6 }
  0x95   :  { %v65_v13 = vld [vmem:[#allocation3] sm:$0xff] }
  0x96   :  { %108 = vrot.lane.b32.xlu1 %v65_v13, %s356_s0  ;;  %92 = vrot.lane.b32.xlu0 %v65_v13, %s357_s1  ;;  %v158_v14 = vmul.f32 %v65_v13, %v398_v12  ;;  %v66_v15 = vmul.f32 %v65_v13, %v65_v13 }
  0x97   :  { %84 = vrot.lane.b32.xlu2 %v65_v13, %s358_s19 }
  0x98   :  { %v159_v16 = vsel %vm52_vm1, %v158_v14, 0.0  ;;  %v67_v17 = vsel %vm52_vm1, %v66_v15, 0.0  ;;  %vm233_vm1 = vcmask 56320  }
  0x9e   :  { %165 = vrot.lane.b32.xlu1 %v65_v13, %s359_s20  ;;  %132 = vrot.lane.b32.xlu0 %v65_v13, %s360_s21 }
  0x9f   :  { %116 = vrot.lane.b32.xlu2 %v65_v13, %s361_s22 }
  0xa6   :  { %172 = vrot.lane.b32.xlu1 %v65_v13, %s362_s23  ;;  %215 = vrot.lane.b32.xlu0 %v65_v13, %s363_s24 }
  0xa7   :  { %137 = vrot.lane.b32.xlu2 %v65_v13, %s364_s25 }
  0xae   :  { %186 = vrot.lane.b32.xlu1 %v65_v13, %s365_s26 }
  0xaf   :  { %193 = vrot.lane.b32.xlu2 %v65_v13, %s366_s27 }
  0xb7   :  { %208 = vrot.lane.b32.xlu2 %v65_v13, %s367_s28 }
  0xd8   :  { %63 = vadd.xlane.f32.xlu1 %v62_v19 }
  0xe0   :  { %160 = vadd.xlane.f32.xlu2 %v159_v16  ;;  %68 = vadd.xlane.f32.xlu1 %v67_v17 }
  0xf1   :  { %v85_v20 = vpop.permute.xlu2 %84 }
  0xf2   :  { %v87_v36 = vmul.f32 %v85_v20, %v398_v12 }
  0xf4   :  { %v89_v37 = vsel %vm88_vm3, %v87_v36, 0.0 }
  0xf9   :  { %v117_v21 = vpop.permute.xlu2 %116 }
  0xfa   :  { %v119_v22 = vmul.f32 %v117_v21, %v398_v12 }
  0xfc   :  { %121 = vrot.lane.b32.xlu2 %v119_v22, %s365_s26 }
 0x101   :  { %v138_v23 = vpop.permute.xlu2 %137 }
 0x102   :  { %v140_v24 = vmul.f32 %v138_v23, %v398_v12 }
 0x104   :  { %142 = vrot.lane.b32.xlu2 %v140_v24, %s359_s20 }
 0x108   :  { %v109_v25 = vpop.permute.xlu1 %108  ;;  %v93_v26 = vpop.permute.xlu0 %92 }
 0x109   :  { %v95_v27 = vmul.f32 %v93_v26, %v398_v12  ;;  %v194_v28 = vpop.permute.xlu2 %193  ;;  %v111_v39 = vmul.f32 %v109_v25, %v398_v12 }
 0x10a   :  { %v196_v30 = vmul.f32 %v194_v28, %v398_v12 }
 0x10b   :  { %97 = vrot.lane.b32.xlu1 %v95_v27, %s367_s28  ;;  %v113_v40 = vsel %vm112_vm4, %v111_v39, 0.0 }
 0x110   :  { %v166_v29 = vpop.permute.xlu1 %165  ;;  %v133_v33 = vpop.permute.xlu0 %132 }
 0x111   :  { %v168_v31 = vmul.f32 %v166_v29, %v398_v12  ;;  %v209_v44 = vpop.permute.xlu2 %208  ;;  %v135_v2 = vmul.f32 %v133_v33, %v398_v12 }
 0x112   :  { %v211_v5 = vmul.f32 %v209_v44, %v398_v12 }
 0x113   :  { %198 = vrot.lane.b32.xlu1 %v196_v30, %s356_s0  ;;  %v169_v32 = vsel %vm145_vm2, %v168_v31, 0.0 }
 0x114   :  { %170 = vadd.xlane.f32.xlu0 %v169_v32  ;;  %v212_v6 = vsel %vm100_vm6, %v211_v5, 0.0 }
 0x118   :  { %v216_v34 = vpop.permute.xlu0 %215  ;;  %v173_v38 = vpop.permute.xlu1 %172 }
 0x119   :  { %v218_v35 = vmul.f32 %v216_v34, %v398_v12  ;;  %v175_v55 = vmul.f32 %v173_v38, %v398_v12 }
 0x120   :  { %v187_v41 = vpop.permute.xlu1 %186 }
 0x121   :  { %v189_v42 = vmul.f32 %v187_v41, %v398_v12 }
 0x123   :  { %v190_v43 = vsel %vm124_vm5, %v189_v42, 0.0 }
 0x128   :  { %220 = vrot.lane.b32.xlu0 %v218_v35, %s358_s19 }
 0x12d   :  { %90 = vadd.xlane.f32.xlu2 %v89_v37 }
 0x13d   :  { %114 = vadd.xlane.f32.xlu1 %v113_v40 }
 0x145   :  { %191 = vadd.xlane.f32.xlu1 %v190_v43 }
 0x14b   :  { %v64_v45 = vpop.xlane.xlu1 %63 }
 0x153   :  { %v161_v46 = vpop.xlane.xlu2 %160  ;;  %v69_v47 = vpop.xlane.xlu1 %68 }
 0x154   :  { %v423_v48 = vmul.f32 %v69_v47, %v64_v45  ;;  %v163_v22 = vsel %vm162_vm10, %v161_v46, 0.0 }
 0x156   :  { %274 = vrsqrt.f32 %v423_v48  ;;  %vm77_vm15 = vweird.f32 %v423_v48 }
 0x15b   :  { %v122_v49 = vpop.permute.xlu2 %121 }
 0x15c   :  { %v125_v56 = vsel %vm124_vm5, %v122_v49, 0.0  ;;  %v275_v29 = vpop.eup %274 }
 0x15d   :  { %v72_v30 = vmul.f32 %v275_v29, %v423_v48  ;;  %vm78_vm14 = vweird.f32 %v275_v29 }
 0x15e   :  { %vm79_vm0 = vmor %vm77_vm15, %vm78_vm14 }
 0x15f   :  { %v73_v31 = vmul.f32 %v275_v29, %v72_v30 }
 0x161   :  { %v74_v32 = vmul.f32 0.5, %v73_v31 }
 0x163   :  { %v143_v50 = vpop.permute.xlu2 %142  ;;  %v75_v33 = vsub.f32 1.5, %v74_v32 }
 0x164   :  { %v146_v51 = vsel %vm145_vm2, %v143_v50, 0.0 }
 0x165   :  { %147 = vadd.xlane.f32.xlu1 %v146_v51  ;;  %v76_v36 = vmul.f32 %v275_v29, %v75_v33 }
 0x167   :  { %v80_v40 = vsel %vm79_vm0, %v275_v29, %v76_v36 }
 0x17d   :  { %v98_v53 = vpop.permute.xlu1 %97 }
 0x17e   :  { %v101_v54 = vsel %vm100_vm6, %v98_v53, 0.0 }
 0x17f   :  { %102 = vadd.xlane.f32.xlu0 %v101_v54 }
 0x185   :  { %v199_v59 = vpop.permute.xlu1 %198 }
 0x186   :  { %v201_v60 = vsel %vm112_vm4, %v199_v59, 0.0 }
 0x187   :  { %v171_v57 = vpop.xlane.xlu0 %170  ;;  %126 = vadd.xlane.f32.xlu0 %v125_v56 }
 0x188   :  { %v177_v58 = vadd.f32 %v175_v55, %v171_v57 }
 0x18a   :  { %181 = vperm.xlu1 %271, %v177_v58  }
 0x18f   :  { %202 = vadd.xlane.f32.xlu0 %v201_v60 }
 0x19a   :  { %v221_v61 = vpop.permute.xlu0 %220 }
 0x19b   :  { %v223_v62 = vsel %vm88_vm3, %v221_v61, 0.0 }
 0x1a0   :  { %v91_v11 = vpop.xlane.xlu2 %90 }
 0x1b0   :  { %v115_v0 = vpop.xlane.xlu1 %114 }
 0x1b4   :  { %224 = vadd.xlane.f32.xlu1 %v223_v62 }
 0x1b8   :  { %v192_v1 = vpop.xlane.xlu1 %191 }
 0x1d8   :  { %v148_v3 = vpop.xlane.xlu1 %147 }
 0x1d9   :  { %v149_v4 = vadd.f32 %v148_v3, %v135_v2 }
 0x1db   :  { %153 = vperm.xlu2 %272, %v149_v4  }
 0x1f2   :  { %v103_v7 = vpop.xlane.xlu0 %102 }
 0x1f3   :  { %v104_v14 = vadd.f32 %v103_v7, %v91_v11 }
 0x1f5   :  { %v106_v16 = vsel %vm105_vm8, %v104_v14, 0.0 }
 0x1fa   :  { %v127_v9 = vpop.xlane.xlu0 %126 }
 0x1fb   :  { %v128_v13 = vadd.f32 %v127_v9, %v115_v0 }
 0x1fc   :  { %v182_v20 = vpop.permute.xlu1 %181 }
 0x1fd   :  { %v130_v15 = vsel %vm129_vm7, %v128_v13, 0.0  ;;  %v184_v25 = vsel %vm178_vm11, %v182_v20, 0.0 }
 0x1fe   :  { %v131_v18 = vadd.f32 %v130_v15, %v106_v16 }
 0x202   :  { %v203_v17 = vpop.xlane.xlu0 %202 }
 0x203   :  { %v204_v23 = vadd.f32 %v203_v17, %v192_v1 }
 0x204   :  { %213 = vadd.xlane.f32.xlu2 %v212_v6 }
 0x205   :  { %v206_v27 = vsel %vm205_vm12, %v204_v23, 0.0 }
 0x227   :  { %v225_v34 = vpop.xlane.xlu1 %224 }
 0x235   :  { %v154_v19 = vpop.permute.xlu2 %153 }
 0x236   :  { %v156_v12 = vsel %vm150_vm9, %v154_v19, 0.0 }
 0x237   :  { %v157_v21 = vadd.f32 %v156_v12, %v131_v18 }
 0x239   :  { %v164_v24 = vadd.f32 %v163_v22, %v157_v21 }
 0x23b   :  { %v185_v26 = vadd.f32 %v184_v25, %v164_v24 }
 0x23d   :  { %v207_v28 = vadd.f32 %v206_v27, %v185_v26 }
 0x277   :  { %v214_v35 = vpop.xlane.xlu2 %213 }
 0x278   :  { %v226_v37 = vadd.f32 %v225_v34, %v214_v35 }
 0x27a   :  { %v228_v38 = vsel %vm227_vm13, %v226_v37, 0.0 }
 0x27b   :  { %v229_v39 = vadd.f32 %v228_v38, %v207_v28 }
 0x27d   :  { %v230_v41 = vmul.f32 %v229_v39, %v80_v40 }
 0x27f   :  { %v253_v42 = vclamps-f32 %v230_v41, 1.0 }
 0x281   :  { %234 = vst.msk [vmem:[#allocation9] sm:$0xff] %vm233_vm1, %v253_v42 }
 0x282   :  { %245 = dma.vmem_to_hbm [thread:$0]  %s241_s30, 128, %s243_s5, [#allocation6]  }
 0x283   :  { %352 = dma.done.wait [#allocation6], 128  }
 0x284   :  { %353 = vsyncadd [#allocation6], 4294967168 }
 0x285   :  { %250 = vsyncpa [#allocation5], 1 }
 0x286   :  { %251 = vsyncpa [#allocation8], 1 }
 0x287   :  { %252 = vsyncpa [#allocation6], 1 }

</bundles_post_ra>
